<compile_context>
chip_gen: v5e
topology: v5e:2x2
jax: 0.10.0
libtpu: 0.0.40
codegen_flags: <defaults>
</compile_context>

<pallas_src>
import jax
import jax.numpy as jnp
from jax.experimental import pallas as pl
from jax.experimental.pallas import tpu as pltpu


# --------------------------------------------------------------------------- #
# Kernels
# --------------------------------------------------------------------------- #
def _mm_wholek_kernel(w_ref, x_ref, o_ref):
    # Whole-K panels: one MXU burst per (i, j) output tile, no reduction loop.
    o_ref[...] = jnp.dot(
        w_ref[...], x_ref[...], preferred_element_type=jnp.float32
    ).astype(o_ref.dtype)


def _mm_ktiled_kernel(w_ref, x_ref, o_ref):
    # Fallback for very large K: K is the last grid axis, the f32 output block
    # is resident across it, so accumulate directly into o_ref (no scratch).
    @pl.when(pl.program_id(2) == 0)
    def _():
        o_ref[...] = jnp.zeros_like(o_ref)

    o_ref[...] += jnp.dot(
        w_ref[...], x_ref[...], preferred_element_type=jnp.float32
    )


# --------------------------------------------------------------------------- #
# Wrapper helpers
# --------------------------------------------------------------------------- #
def _vmem_info():
    """Returns (usable VMEM budget in bytes, looks-like-a-2-TensorCore-chip)."""
    cap = 64 << 20  # conservative default (v7x-class)
    try:
        cap = int(pltpu.get_tpu_info().vmem_capacity_bytes)
    except Exception:
        pass
    if cap <= (64 << 20):       # v7x: 64 MiB VMEM per TC, 2 TensorCores
        return 48 << 20, True
    return 100 << 20, False     # v5e / v6e: 128 MiB VMEM, 1 TensorCore


def _pick_tile(dim, preferred, align):
    """Pick (tile, padded_dim) for one axis.

    A tile equal to the full dim is always layout-legal (no padding).  If the
    dim is larger than `preferred`, pick the largest `align`-aligned tile that
    divides it; only pad (rare) when no aligned divisor exists.
    """
    if dim <= preferred:
        return dim, dim
    for cand in range(preferred, align - 1, -align):
        if dim % cand == 0:
            return cand, dim
    padded = -(-dim // preferred) * preferred
    return preferred, padded


def _pad2d(a, d0, d1):
    p0, p1 = d0 - a.shape[0], d1 - a.shape[1]
    if p0 or p1:
        a = jnp.pad(a, ((0, p0), (0, p1)))
    return a


# --------------------------------------------------------------------------- #
# Pallas matmul
# --------------------------------------------------------------------------- #
def pallas_matmul(w, x):
    """w: (M, K) @ x: (K, N) -> (M, N), computed on the MXU with Pallas."""
    M, K = w.shape
    K2, N = x.shape
    assert K == K2, (w.shape, x.shape)

    out_dtype = jnp.promote_types(w.dtype, x.dtype)
    budget, two_cores = _vmem_info()

    w_b = jnp.dtype(w.dtype).itemsize
    x_b = jnp.dtype(x.dtype).itemsize
    o_b = jnp.dtype(out_dtype).itemsize

    # --- choose M / N tiles: 256-preferred (fills the 256x256 MXU) ---------
    tm, Mp = _pick_tile(M, 256, 8)
    tn, Np = _pick_tile(N, 256, 128)

    # On a 2-TC chip make sure there are >= 2 parallel blocks to shard.
    if two_cores and (Mp // tm) * (Np // tn) == 1 and tm >= 16 and tm % 16 == 0:
        tm = tm // 2
    gm, gn = Mp // tm, Np // tn

    # Double-buffered input panels + double-buffered output tile.
    def footprint(tk):
        return 2 * (tm * tk * w_b + tk * tn * x_b) + 2 * tm * tn * o_b

    if footprint(K) <= budget:
        # ------------------- whole-K panels, grid = (gm, gn) ----------------
        vmem_limit = min(budget, max(2 * footprint(K), 16 << 20))
        out = pl.pallas_call(
            _mm_wholek_kernel,
            out_shape=jax.ShapeDtypeStruct((Mp, Np), out_dtype),
            grid_spec=pltpu.PrefetchScalarGridSpec(
                num_scalar_prefetch=0,
                grid=(gm, gn),
                in_specs=[
                    pl.BlockSpec((tm, K), lambda i, j: (i, 0)),
                    pl.BlockSpec((K, tn), lambda i, j: (0, j)),
                ],
                out_specs=pl.BlockSpec((tm, tn), lambda i, j: (i, j)),
            ),
            compiler_params=pltpu.CompilerParams(
                dimension_semantics=("parallel", "parallel"),
                vmem_limit_bytes=vmem_limit,
            ),
        )(_pad2d(w, Mp, K), _pad2d(x, K, Np))
    else:
        # ------------- large-K fallback: K-tiled, accumulate in o_ref -------
        tk = 1024
        while tk > 128 and footprint(tk) > budget:
            tk -= 128
        Kp = -(-K // tk) * tk
        gk = Kp // tk
        vmem_limit = min(budget, max(2 * footprint(tk), 16 << 20))
        out = pl.pallas_call(
            _mm_ktiled_kernel,
            out_shape=jax.ShapeDtypeStruct((Mp, Np), jnp.float32),
            grid_spec=pltpu.PrefetchScalarGridSpec(
                num_scalar_prefetch=0,
                grid=(gm, gn, gk),
                in_specs=[
                    pl.BlockSpec((tm, tk), lambda i, j, k: (i, k)),
                    pl.BlockSpec((tk, tn), lambda i, j, k: (k, j)),
                ],
                out_specs=pl.BlockSpec((tm, tn), lambda i, j, k: (i, j)),
            ),
            compiler_params=pltpu.CompilerParams(
                dimension_semantics=("parallel", "parallel", "arbitrary"),
                vmem_limit_bytes=vmem_limit,
            ),
        )(_pad2d(w, Mp, Kp), _pad2d(x, Kp, Np))
        if out.dtype != out_dtype:
            out = out.astype(out_dtype)

    if (Mp, Np) != (M, N):
        out = out[:M, :N]
    return out


def radar_base_forward(w, r, x):
    """Pallas equivalent of Radar_Base.forward: returns (w @ x, r)."""
    # self.r is a parameter returned unchanged — identity, no kernel required.
    return pallas_matmul(w, x), r


# --------------------------------------------------------------------------- #
# Demo / self-test
# --------------------------------------------------------------------------- #
if __name__ == "__main__":
    key = jax.random.PRNGKey(0)

    # Small shapes consistent with Radar: w (n, n), x (n, d), r (n, d).
    n, d = 256, 128

    key, kw, kr, kx = jax.random.split(key, 4)
    w = jax.random.normal(kw, (n, n), jnp.float32)
    r = jax.random.normal(kr, (n, d), jnp.float32)
    x = jax.random.normal(kx, (n, d), jnp.float32)

    out, r_out = radar_base_forward(w, r, x)
    out = jax.block_until_ready(out)
    r_out = jax.block_until_ready(r_out)

    # Correctness check against the pure-JAX reference.
    ref = jnp.dot(w, x, preferred_element_type=jnp.float32)
    assert out.shape == (n, d)
    assert r_out.shape == (n, d)
    assert bool(jnp.all(jnp.isfinite(out)))
    assert bool(jnp.allclose(out, ref, rtol=1e-4, atol=1e-4))
    assert bool(jnp.array_equal(r_out, r))
    print("KERNEL_OK")
</pallas_src>

<mosaic_0001>
module attributes {stable_mosaic.version = 11 : i64} {
  func.func @_mm_wholek_kernel(%arg0: i32, %arg1: i32, %arg2: memref<128x256xf32, #tpu.memory_space<vmem>>, %arg3: memref<256x128xf32, #tpu.memory_space<vmem>>, %arg4: memref<128x128xf32, #tpu.memory_space<vmem>>) attributes {dimension_semantics = [#tpu.dimension_semantics<parallel>, #tpu.dimension_semantics<parallel>], iteration_bounds = array<i64: 2, 1>, scalar_prefetch = 0 : i64, scratch_operands = 0 : i64, tpu.core_type = #tpu.core_type<tc>, window_params = [{transform_indices = @transform_0, window_bounds = array<i64: 128, 256>}, {transform_indices = @transform_1, window_bounds = array<i64: 256, 128>}, {transform_indices = @transform_2, window_bounds = array<i64: 128, 128>}]} {
    %c0 = arith.constant 0 : index
    %c0_0 = arith.constant 0 : index
    %0 = vector.load %arg2[%c0, %c0_0] : memref<128x256xf32, #tpu.memory_space<vmem>>, vector<128x256xf32>
    %c0_1 = arith.constant 0 : index
    %c0_2 = arith.constant 0 : index
    %1 = vector.load %arg3[%c0_1, %c0_2] : memref<256x128xf32, #tpu.memory_space<vmem>>, vector<256x128xf32>
    %cst = arith.constant dense<0.000000e+00> : vector<128x128xf32>
    %2 = tpu.matmul %0, %1, %cst {dimension_numbers = #tpu.dot_dimension_numbers<[1], [0], [0], [1], [0, 0, 1, 1], [], []>} : vector<128x256xf32>, vector<256x128xf32>, vector<128x128xf32> -> vector<128x128xf32>
    %c0_3 = arith.constant 0 : index
    %c0_4 = arith.constant 0 : index
    %3 = vector.load %arg4[%c0_3, %c0_4] : memref<128x128xf32, #tpu.memory_space<vmem>>, vector<128x128xf32>
    tpu.vector_store %arg4[%c0_3, %c0_4], %2 {strides = array<i32>} : memref<128x128xf32, #tpu.memory_space<vmem>>, vector<128x128xf32>,
    return
  }
  func.func @transform_0(%arg0: i32, %arg1: i32) -> (i32, i32) {
    %c0_i32 = arith.constant 0 : i32
    %c0_i32_0 = arith.constant 0 : i32
    return %arg0, %c0_i32 : i32, i32
  }
  func.func @transform_1(%arg0: i32, %arg1: i32) -> (i32, i32) {
    %c0_i32 = arith.constant 0 : i32
    %c0_i32_0 = arith.constant 0 : i32
    return %c0_i32, %arg1 : i32, i32
  }
  func.func @transform_2(%arg0: i32, %arg1: i32) -> (i32, i32) {
    %c0_i32 = arith.constant 0 : i32
    return %arg0, %arg1 : i32, i32
  }
}

</mosaic_0001>

<bundles_post_ra>
// kernel: tpu_custom_call.1
= control target key start
LH: loop header
LB: loop body
LE: loop exit
PB: predicated region body
PF: predicated region fallthrough
CT: control target
= control target key end

     0   :  { %7 = vsyncpa [#allocation3], 0  ;;  %s1032_s0 = inlined_call_operand.hbm [shape: f32[256,256], index: 0, kind: input, shape index: {}]   ;;  %s1033_s1 = inlined_call_operand.hbm [shape: f32[256,128], index: 1, kind: input, shape index: {}]   ;;  %s1034_s2 = inlined_call_operand.hbm [shape: f32[256,128], index: 2, kind: output, shape index: {}]  }
   0x1   :  { %9 = vsyncpa [#allocation3 + $0x1], 0 }
   0x2   :  { %10 = vsyncpa [#allocation6], 0 }
   0x3   :  { %11 = vsyncpa [#allocation4], 0 }
   0x4   :  { %13 = vsyncpa [#allocation4 + $0x1], 0  ;;  %s829_s9 = smov 0   ;;  %s831_s10 = smov 0  }
   0x5   :  { %s833_s11 = smov 0   ;;  %s835_s12 = smov 0  }
   0x6   :  { %s837_s13 = smov 0   ;;  %s839_s14 = smov 0  }
   0x7 LB: > { %s527_s15 = sadd.s32 4294967295, %s805_s14   ;;  %s528_s16 = sadd.s32 4294967294, %s805_s14   ;;  %s805_s14 = sphi %s839_s14, %s19_s14   ;;  %s801_s13 = sphi %s837_s13, %s1046_s13   ;;  %s797_s12 = sphi %s835_s12, %s1045_s12   ;;  %s793_s11 = sphi %s833_s11, %s1044_s11   ;;  %s789_s10 = sphi %s831_s10, %s1043_s10   ;;  %s785_s9 = sphi %s829_s9, %s1042_s9  }
   0x8   : > { %p51_p0 = scmp.ne.s32.totalorder %s789_s10, %s785_s9  ;;  %p863_p1 = scmp.eq.s32.totalorder %s527_s15, 0 }
   0x9   : > { %p867_p2 = scmp.eq.s32.totalorder %s527_s15, 1  ;;  %p109_p3 = scmp.eq.s32.totalorder %s528_s16, 1 }
   0xa   : > { %p873_p4 = por %p863_p1, %p51_p0  ;;  %p529_p5 = scmp.ge.s32.totalorder %s805_s14, 1 }
   0xb   : > { %p878_p6 = por %p109_p3, %p51_p0  ;;  %p116_p7 = scmp.lt.s32.totalorder %s805_s14, 3 }
   0xc   : > { %s129_s23 = sshll.u32 %s1033_s1, 4  ;;  %s807_s25 = smov [#allocation5]   ;;  %s130_s23 = int_to_ptr.hbm [resolvable:$true] %s129_s23 }
   0xd   : > { %p886_p8 = pnand %p529_p5, %p116_p7  ;;  %s131_s26 = sshll.u32 %s807_s25, 4  ;;  %s132_s26 = int_to_ptr.vmem [resolvable:$true] %s131_s26 }
   0xe   : > { %p531_p11 = scmp.ge.s32.totalorder %s805_s14, 2  ;;  %s808_s27 = smov 128  }
   0xf   : > { %p588_p9 = pneg %p886_p8  ;;  %s809_s28 = smov 8  }
  0x10   : > { %s31_s29 = sadd.s32 1, %s801_s13  ;;  %s38_s30 = sadd.s32 1, %s793_s11 }
  0x11   : > { %p589_p10 = pnand %p588_p9, %p863_p1  ;;  %p33_p12 = scmp.ge.s32.totalorder %s31_s29, 2 }
  0x12   : > { %p45_p13 = scmp.ne.s32.totalorder %s793_s11, %s789_s10  ;;  %p46_p0 = scmp.eq.s32.totalorder %s805_s14, 0 }
  0x13   : > { %591 = dma.hbm_to_vmem [thread:$0]  (!%p589_p10), %s130_s23, 4096, %s132_s26, [#allocation6], %s808_s27, %s808_s27, %s809_s28  }
  0x14   : > { %s1048_s29 = smov (%p33_p12, %s31_s29), 0  ;;  %p902_p3 = por %p46_p0, %p45_p13 }
  0x15   : > { %p908_p5 = por %p867_p2, %p45_p13  ;;  %s35_s5 = ssub.s32 %s801_s13, %s1048_s29 }
  0x16   : > { %p601_p7 = scmp.lt.s32.totalorder %s805_s14, 2  ;;  %p36_p9 = scmp.eq.s32.totalorder %s35_s5, 0 }
  0x17   : > { %s145_s6 = sand.u32 1, %s793_s11   ;;  %s546_s15 = sshll.u32 %s801_s13, 8 }
  0x18   : > { %s532_s7 = sshll.u32 %s145_s6, 8  ;;  %s155_s22 = scalar_lea.hbm %s1032_s0, %s546_s15 }
  0x19   : > { %s917_s8 = scalar_select %p36_p9, %s793_s11, %s38_s30  }
  0x1a   : > { %s149_s23 = scalar_lea.vmem [#allocation2], %s532_s7  ;;  %s156_s18 = sshll.u32 %s155_s22, 4  ;;  %s157_s18 = int_to_ptr.hbm [resolvable:$true] %s156_s18 }
  0x1b   : > { %s158_s25 = sshll.u32 %s149_s23, 4  ;;  %p593_p2 = pnand %p601_p7, %p902_p3  ;;  %s159_s25 = int_to_ptr.vmem [resolvable:$true] %s158_s25 }
  0x1c   : > { %s146_s26 = scalar_lea.sflag [#allocation3], %s145_s6  ;;  %s810_s27 = smov 256  }
  0x1d   : > { %s811_s28 = smov 16   ;;  %170 = sbr.rel (%p886_p8) target bundleno = 264 (0x108), region = 28 }
  0x1e   : > { %595 = dma.hbm_to_vmem [thread:$0]  (!%p593_p2), %s157_s18, 4096, %s159_s25, %s146_s26, %s810_s27, %s810_s27, %s811_s28  }
  0x1f   : > { %s928_s30 = sand.u32 (!%p886_p8), 1, %s789_s10  }
  0x20   : > { %s537_s5 = sshll.u32 (!%p886_p8), %s928_s30, 8  ;;  %s173_s7 = scalar_lea.sflag (!%p886_p8), [#allocation3], %s928_s30 }
  0x21   : > { %s932_s15 = scalar_lea.vmem (!%p886_p8), [#allocation2], %s537_s5 }
  0x22   : > { %772 = dma.done.wait (%p873_p4), %s173_s7, 4096  }
  0x23   : > { %774 = vsyncadd (%p873_p4), %s173_s7, 4294963200 }
  0x24   : > { %776 = dma.done.wait (%p863_p1), [#allocation6], 4096  }
  0x25   : > { %778 = vsyncadd (%p863_p1), [#allocation6], 4294963200  ;;  %v252_v0 = vld [vmem:[#allocation5 + $0x78] sm:$0xff]  ;;  %v251_v2 = vld [vmem:[#allocation5 + $0x70] sm:$0xff]  ;;  %s539_s17 = sshll.u32 %s928_s30, 7  ;;  %s547_s24 = sshll.u32 %s797_s12, 7 }
  0x26   : > { %v268_v1 = vld [vmem:[#allocation5 + $0xf8] sm:$0xff]  ;;  %548 = vmatpush.msra.mxu2 %v252_v0  ;;  %v267_v3 = vld [vmem:[#allocation5 + $0xf0] sm:$0xff]  ;;  %v250_v4 = vld [vmem:[#allocation5 + $0x68] sm:$0xff]  ;;  %269 = vmatpush.msra.mxu0 %v252_v0  ;;  %s975_s19 = scalar_lea.vmem [#allocation7], %s539_s17  ;;  %s428_s16 = scalar_lea.hbm %s1034_s2, %s547_s24 }
  0x27   : > { %564 = vmatpush.msra.mxu3 %v268_v1  ;;  %v266_v5 = vld [vmem:[#allocation5 + $0xe8] sm:$0xff]  ;;  %334 = vmatpush.msra.mxu1 %v268_v1  ;;  %v249_v6 = vld [vmem:[#allocation5 + $0x60] sm:$0xff]  ;;  %v248_v8 = vld [vmem:[#allocation5 + $0x58] sm:$0xff]  ;;  %s429_s21 = sshll.u32 %s975_s19, 4  ;;  %s431_s22 = sshll.u32 %s428_s16, 4  ;;  %s430_s21 = int_to_ptr.vmem [resolvable:$true] %s429_s21  ;;  %s432_s22 = int_to_ptr.hbm [resolvable:$true] %s431_s22 }
  0x28   : > { %549 = vmatpush.msra.mxu2 %v251_v2  ;;  %v265_v7 = vld [vmem:[#allocation5 + $0xe0] sm:$0xff]  ;;  %270 = vmatpush.msra.mxu0 %v251_v2  ;;  %v264_v9 = vld [vmem:[#allocation5 + $0xd8] sm:$0xff]  ;;  %v247_v10 = vld [vmem:[#allocation5 + $0x50] sm:$0xff]  ;;  %s416_s12 = scalar_lea.sflag [#allocation4], %s928_s30  ;;  %s733_s23 = sshra.s32 %s432_s22, 4  ;;  %s734_s23 = int_to_ptr.hbm [resolvable:$true] %s733_s23 }
  0x29   : > { %565 = vmatpush.msra.mxu3 %v267_v3  ;;  %335 = vmatpush.msra.mxu1 %v267_v3  ;;  %v263_v11 = vld [vmem:[#allocation5 + $0xd0] sm:$0xff]  ;;  %v246_v12 = vld [vmem:[#allocation5 + $0x48] sm:$0xff]  ;;  %v245_v14 = vld [vmem:[#allocation5 + $0x40] sm:$0xff]  ;;  %s735_s25 = scalar_lea.hbm %s734_s23, 128  ;;  %s739_s27 = scalar_lea.hbm %s1034_s2, 256 }
  0x2a   : > { %550 = vmatpush.msra.mxu2 %v250_v4  ;;  %271 = vmatpush.msra.mxu0 %v250_v4  ;;  %v262_v13 = vld [vmem:[#allocation5 + $0xc8] sm:$0xff]  ;;  %v261_v15 = vld [vmem:[#allocation5 + $0xc0] sm:$0xff]  ;;  %v244_v16 = vld [vmem:[#allocation5 + $0x38] sm:$0xff]  ;;  %p736_p1 = scmp.ne.s32.totalorder %s734_s23, %s735_s25  ;;  %p740_p10 = scmp.lt.s32.totalorder %s734_s23, %s1034_s2 }
  0x2b   : > { %566 = vmatpush.msra.mxu3 %v266_v5  ;;  %336 = vmatpush.msra.mxu1 %v266_v5  ;;  %v260_v17 = vld [vmem:[#allocation5 + $0xb8] sm:$0xff]  ;;  %v243_v18 = vld [vmem:[#allocation5 + $0x30] sm:$0xff]  ;;  %v242_v20 = vld [vmem:[#allocation5 + $0x28] sm:$0xff]  ;;  %p741_p12 = scmp.lt.s32.totalorder %s739_s27, %s735_s25 }
  0x2c   : > { %551 = vmatpush.msra.mxu2 %v249_v6  ;;  %272 = vmatpush.msra.mxu0 %v249_v6  ;;  %v259_v19 = vld [vmem:[#allocation5 + $0xb0] sm:$0xff]  ;;  %v258_v21 = vld [vmem:[#allocation5 + $0xa8] sm:$0xff]  ;;  %v241_v22 = vld [vmem:[#allocation5 + $0x20] sm:$0xff]  ;;  %p737_p4 = pnand %p736_p1, %p908_p5 }
  0x2d   : > { %567 = vmatpush.msra.mxu3 %v265_v7  ;;  %337 = vmatpush.msra.mxu1 %v265_v7  ;;  %v257_v23 = vld [vmem:[#allocation5 + $0xa0] sm:$0xff]  ;;  %v240_v24 = vld [vmem:[#allocation5 + $0x18] sm:$0xff]  ;;  %v239_v26 = vld [vmem:[#allocation5 + $0x10] sm:$0xff]  ;;  %p742_p13 = por %p741_p12, %p740_p10 }
  0x2e   : > { %552 = vmatpush.msra.mxu2 %v248_v8  ;;  %273 = vmatpush.msra.mxu0 %v248_v8  ;;  %v256_v25 = vld [vmem:[#allocation5 + $0x98] sm:$0xff]  ;;  %v255_v27 = vld [vmem:[#allocation5 + $0x90] sm:$0xff]  ;;  %v238_v28 = vld [vmem:[#allocation5 + $0x8] sm:$0xff]  ;;  %p738_p8 = pneg %p737_p4 }
  0x2f   : > { %568 = vmatpush.msra.mxu3 %v264_v9  ;;  %338 = vmatpush.msra.mxu1 %v264_v9  ;;  %v254_v29 = vld [vmem:[#allocation5 + $0x88] sm:$0xff]  ;;  %v237_v30 = vld [vmem:[#allocation5] sm:$0xff]  ;;  %v223_v36 = vld [vmem:[%s932_s15 + $0x90] sm:$0xff] }
  0x30   : > { %553 = vmatpush.msra.mxu2 %v247_v10  ;;  %274 = vmatpush.msra.mxu0 %v247_v10  ;;  %v253_v31 = vld [vmem:[#allocation5 + $0x80] sm:$0xff]  ;;  %v222_v33 = vld [vmem:[%s932_s15 + $0x88] sm:$0xff]  ;;  %v224_v37 = vld [vmem:[%s932_s15 + $0x98] sm:$0xff]  ;;  %p743_p0 = pnand %p742_p13, %p738_p8 }
  0x31   : > { %569 = vmatpush.msra.mxu3 %v263_v11  ;;  %339 = vmatpush.msra.mxu1 %v263_v11  ;;  %v221_v32 = vld [vmem:[%s932_s15 + $0x80] sm:$0xff]  ;;  %v206_v35 = vld [vmem:[%s932_s15 + $0x8] sm:$0xff]  ;;  %v207_v38 = vld [vmem:[%s932_s15 + $0x10] sm:$0xff] }
  0x32   : > { %554 = vmatpush.msra.mxu2 %v246_v12  ;;  %275 = vmatpush.msra.mxu0 %v246_v12  ;;  %v205_v34 = vld [vmem:[%s932_s15] sm:$0xff]  ;;  %v208_v39 = vld [vmem:[%s932_s15 + $0x18] sm:$0xff]  ;;  %v226_v41 = vld [vmem:[%s932_s15 + $0xa8] sm:$0xff] }
  0x33   : > { %570 = vmatpush.msra.mxu3 %v262_v13  ;;  %340 = vmatpush.msra.mxu1 %v262_v13  ;;  %v225_v40 = vld [vmem:[%s932_s15 + $0xa0] sm:$0xff]  ;;  %v210_v43 = vld [vmem:[%s932_s15 + $0x28] sm:$0xff]  ;;  %v227_v44 = vld [vmem:[%s932_s15 + $0xb0] sm:$0xff] }
  0x34   : > { %555 = vmatpush.msra.mxu2 %v245_v14  ;;  %276 = vmatpush.msra.mxu0 %v245_v14  ;;  %v209_v42 = vld [vmem:[%s932_s15 + $0x20] sm:$0xff]  ;;  %v228_v45 = vld [vmem:[%s932_s15 + $0xb8] sm:$0xff]  ;;  %v211_v46 = vld [vmem:[%s932_s15 + $0x30] sm:$0xff] }
  0x35   : > { %571 = vmatpush.msra.mxu3 %v261_v15  ;;  %341 = vmatpush.msra.mxu1 %v261_v15  ;;  %v212_v47 = vld [vmem:[%s932_s15 + $0x38] sm:$0xff]  ;;  %v229_v48 = vld [vmem:[%s932_s15 + $0xc0] sm:$0xff]  ;;  %v230_v49 = vld [vmem:[%s932_s15 + $0xc8] sm:$0xff] }
  0x36   : > { %556 = vmatpush.msra.mxu2 %v244_v16  ;;  %277 = vmatpush.msra.mxu0 %v244_v16  ;;  %v213_v50 = vld [vmem:[%s932_s15 + $0x40] sm:$0xff]  ;;  %v214_v51 = vld [vmem:[%s932_s15 + $0x48] sm:$0xff]  ;;  %v231_v52 = vld [vmem:[%s932_s15 + $0xd0] sm:$0xff] }
  0x37   : > { %572 = vmatpush.msra.mxu3 %v260_v17  ;;  %342 = vmatpush.msra.mxu1 %v260_v17  ;;  %v232_v53 = vld [vmem:[%s932_s15 + $0xd8] sm:$0xff]  ;;  %v215_v54 = vld [vmem:[%s932_s15 + $0x50] sm:$0xff]  ;;  %v233_v56 = vld [vmem:[%s932_s15 + $0xe0] sm:$0xff] }
  0x38   : > { %557 = vmatpush.msra.mxu2 %v243_v18  ;;  %278 = vmatpush.msra.mxu0 %v243_v18  ;;  %v216_v55 = vld [vmem:[%s932_s15 + $0x58] sm:$0xff]  ;;  %v234_v57 = vld [vmem:[%s932_s15 + $0xe8] sm:$0xff]  ;;  %v217_v58 = vld [vmem:[%s932_s15 + $0x60] sm:$0xff] }
  0x39   : > { %573 = vmatpush.msra.mxu3 %v259_v19  ;;  %343 = vmatpush.msra.mxu1 %v259_v19  ;;  %v218_v59 = vld [vmem:[%s932_s15 + $0x68] sm:$0xff]  ;;  %v235_v60 = vld [vmem:[%s932_s15 + $0xf0] sm:$0xff]  ;;  %v236_v61 = vld [vmem:[%s932_s15 + $0xf8] sm:$0xff] }
  0x3a   : > { %558 = vmatpush.msra.mxu2 %v242_v20  ;;  %279 = vmatpush.msra.mxu0 %v242_v20  ;;  %v219_v62 = vld [vmem:[%s932_s15 + $0x70] sm:$0xff]  ;;  %v220_v63 = vld [vmem:[%s932_s15 + $0x78] sm:$0xff] }
  0x3b   : > { %574 = vmatpush.msra.mxu3 %v258_v21  ;;  %344 = vmatpush.msra.mxu1 %v258_v21 }
  0x3c   : > { %559 = vmatpush.msra.mxu2 %v241_v22  ;;  %280 = vmatpush.msra.mxu0 %v241_v22 }
  0x3d   : > { %575 = vmatpush.msra.mxu3 %v257_v23  ;;  %345 = vmatpush.msra.mxu1 %v257_v23 }
  0x3e   : > { %560 = vmatpush.msra.mxu2 %v240_v24  ;;  %281 = vmatpush.msra.mxu0 %v240_v24 }
  0x3f   : > { %576 = vmatpush.msra.mxu3 %v256_v25  ;;  %346 = vmatpush.msra.mxu1 %v256_v25 }
  0x40   : > { %561 = vmatpush.msra.mxu2 %v239_v26  ;;  %282 = vmatpush.msra.mxu0 %v239_v26 }
  0x41   : > { %577 = vmatpush.msra.mxu3 %v255_v27  ;;  %347 = vmatpush.msra.mxu1 %v255_v27 }
  0x42   : > { %562 = vmatpush.msra.mxu2 %v238_v28  ;;  %283 = vmatpush.msra.mxu0 %v238_v28 }
  0x43   : > { %578 = vmatpush.msra.mxu3 %v254_v29  ;;  %348 = vmatpush.msra.mxu1 %v254_v29 }
  0x44   : > { %563 = vmatpush.msra.mxu2 %v237_v30  ;;  %284 = vmatpush.msra.mxu0 %v237_v30 }
  0x45   : > { %579 = vmatpush.msra.mxu3 %v253_v31  ;;  %309 = vmatmul.f32.vlgmr.msra.gmra.mxu2 %v221_v32 }
  0x46   : > { %374 = vmatmul.f32.vlgmr.msra.gmra.mxu3 %v222_v33  ;;  %349 = vmatpush.msra.mxu1 %v253_v31 }
  0x47   : > { %285 = vmatmul.f32.vlgmr.msra.gmra.mxu0 %v205_v34  ;;  %350 = vmatmul.f32.vlgmr.msra.gmra.mxu1 %v206_v35 }
  0x4d   : > { %312 = vmatmul.f32.gmra.mxu2 %v223_v36 }
  0x4e   : > { %377 = vmatmul.f32.gmra.mxu3 %v224_v37 }
  0x4f   : > { %288 = vmatmul.f32.gmra.mxu0 %v207_v38  ;;  %353 = vmatmul.f32.gmra.mxu1 %v208_v39 }
  0x55   : > { %315 = vmatmul.f32.gmra.mxu2 %v225_v40 }
  0x56   : > { %380 = vmatmul.f32.gmra.mxu3 %v226_v41 }
  0x57   : > { %291 = vmatmul.f32.gmra.mxu0 %v209_v42  ;;  %356 = vmatmul.f32.gmra.mxu1 %v210_v43 }
  0x5d   : > { %318 = vmatmul.f32.gmra.mxu2 %v227_v44 }
  0x5e   : > { %383 = vmatmul.f32.gmra.mxu3 %v228_v45 }
  0x5f   : > { %294 = vmatmul.f32.gmra.mxu0 %v211_v46  ;;  %359 = vmatmul.f32.gmra.mxu1 %v212_v47 }
  0x65   : > { %321 = vmatmul.f32.gmra.mxu2 %v229_v48 }
  0x66   : > { %386 = vmatmul.f32.gmra.mxu3 %v230_v49 }
  0x67   : > { %297 = vmatmul.f32.gmra.mxu0 %v213_v50  ;;  %362 = vmatmul.f32.gmra.mxu1 %v214_v51 }
  0x6d   : > { %324 = vmatmul.f32.gmra.mxu2 %v231_v52 }
  0x6e   : > { %389 = vmatmul.f32.gmra.mxu3 %v232_v53 }
  0x6f   : > { %300 = vmatmul.f32.gmra.mxu0 %v215_v54  ;;  %365 = vmatmul.f32.gmra.mxu1 %v216_v55 }
  0x75   : > { %327 = vmatmul.f32.gmra.mxu2 %v233_v56 }
  0x76   : > { %392 = vmatmul.f32.gmra.mxu3 %v234_v57 }
  0x77   : > { %303 = vmatmul.f32.gmra.mxu0 %v217_v58  ;;  %368 = vmatmul.f32.gmra.mxu1 %v218_v59 }
  0x7d   : > { %330 = vmatmul.f32.gmra.mxu2 %v235_v60 }
  0x7e   : > { %395 = vmatmul.f32.gmra.mxu3 %v236_v61 }
  0x7f   : > { %306 = vmatmul.f32.gmra.mxu0 %v219_v62  ;;  %371 = vmatmul.f32.gmra.mxu1 %v220_v63 }
  0xc4   : > { %v286_v0 = vpop.f32.mrf.mxu0  ;;  %v351_v1 = vpop.f32.mrf.mxu1 }
  0xc5   : > { %v352_v2 = vadd.f32 %v351_v1, %v286_v0 }
  0xc7   : > { %399 = vst [vmem:[%s975_s19] sm:$0xff] %v352_v2 }
  0xc8   : > { %v310_v3 = vpop.f32.mrf.mxu2 }
  0xc9   : > { %v375_v4 = vpop.f32.mrf.mxu3 }
  0xca   : > { %v376_v5 = vadd.f32 %v375_v4, %v310_v3 }
  0xcc   : > { %407 = vst [vmem:[%s975_s19 + $0x40] sm:$0xff] %v376_v5  ;;  %v289_v6 = vpop.f32.mrf.mxu0  ;;  %v354_v7 = vpop.f32.mrf.mxu1 }
  0xcd   : > { %v355_v8 = vadd.f32 %v354_v7, %v289_v6 }
  0xcf   : > { %400 = vst [vmem:[%s975_s19 + $0x8] sm:$0xff] %v355_v8 }
  0xd0   : > { %v313_v9 = vpop.f32.mrf.mxu2 }
  0xd1   : > { %v378_v10 = vpop.f32.mrf.mxu3 }
  0xd2   : > { %v379_v11 = vadd.f32 %v378_v10, %v313_v9 }
  0xd4   : > { %408 = vst [vmem:[%s975_s19 + $0x48] sm:$0xff] %v379_v11  ;;  %v292_v12 = vpop.f32.mrf.mxu0  ;;  %v357_v13 = vpop.f32.mrf.mxu1 }
  0xd5   : > { %v358_v14 = vadd.f32 %v357_v13, %v292_v12 }
  0xd7   : > { %401 = vst [vmem:[%s975_s19 + $0x10] sm:$0xff] %v358_v14 }
  0xd8   : > { %v316_v15 = vpop.f32.mrf.mxu2 }
  0xd9   : > { %v381_v16 = vpop.f32.mrf.mxu3 }
  0xda   : > { %v382_v17 = vadd.f32 %v381_v16, %v316_v15 }
  0xdc   : > { %409 = vst [vmem:[%s975_s19 + $0x50] sm:$0xff] %v382_v17  ;;  %v295_v18 = vpop.f32.mrf.mxu0  ;;  %v360_v19 = vpop.f32.mrf.mxu1 }
  0xdd   : > { %v361_v20 = vadd.f32 %v360_v19, %v295_v18 }
  0xdf   : > { %402 = vst [vmem:[%s975_s19 + $0x18] sm:$0xff] %v361_v20 }
  0xe0   : > { %v319_v21 = vpop.f32.mrf.mxu2 }
  0xe1   : > { %v384_v22 = vpop.f32.mrf.mxu3 }
  0xe2   : > { %v385_v23 = vadd.f32 %v384_v22, %v319_v21 }
  0xe4   : > { %410 = vst [vmem:[%s975_s19 + $0x58] sm:$0xff] %v385_v23  ;;  %v298_v24 = vpop.f32.mrf.mxu0  ;;  %v363_v25 = vpop.f32.mrf.mxu1 }
  0xe5   : > { %v364_v26 = vadd.f32 %v363_v25, %v298_v24 }
  0xe7   : > { %403 = vst [vmem:[%s975_s19 + $0x20] sm:$0xff] %v364_v26 }
  0xe8   : > { %v322_v27 = vpop.f32.mrf.mxu2 }
  0xe9   : > { %v387_v28 = vpop.f32.mrf.mxu3 }
  0xea   : > { %v388_v29 = vadd.f32 %v387_v28, %v322_v27 }
  0xec   : > { %411 = vst [vmem:[%s975_s19 + $0x60] sm:$0xff] %v388_v29  ;;  %v301_v30 = vpop.f32.mrf.mxu0  ;;  %v366_v31 = vpop.f32.mrf.mxu1 }
  0xed   : > { %v367_v32 = vadd.f32 %v366_v31, %v301_v30 }
  0xef   : > { %404 = vst [vmem:[%s975_s19 + $0x28] sm:$0xff] %v367_v32 }
  0xf0   : > { %v325_v33 = vpop.f32.mrf.mxu2 }
  0xf1   : > { %v390_v34 = vpop.f32.mrf.mxu3 }
  0xf2   : > { %v391_v35 = vadd.f32 %v390_v34, %v325_v33 }
  0xf4   : > { %412 = vst [vmem:[%s975_s19 + $0x68] sm:$0xff] %v391_v35  ;;  %v304_v36 = vpop.f32.mrf.mxu0  ;;  %v369_v37 = vpop.f32.mrf.mxu1 }
  0xf5   : > { %v370_v38 = vadd.f32 %v369_v37, %v304_v36 }
  0xf7   : > { %405 = vst [vmem:[%s975_s19 + $0x30] sm:$0xff] %v370_v38 }
  0xf8   : > { %v328_v39 = vpop.f32.mrf.mxu2 }
  0xf9   : > { %v393_v40 = vpop.f32.mrf.mxu3 }
  0xfa   : > { %v394_v41 = vadd.f32 %v393_v40, %v328_v39 }
  0xfc   : > { %413 = vst [vmem:[%s975_s19 + $0x70] sm:$0xff] %v394_v41  ;;  %v307_v42 = vpop.f32.mrf.mxu0  ;;  %v372_v43 = vpop.f32.mrf.mxu1 }
  0xfd   : > { %v373_v44 = vadd.f32 %v372_v43, %v307_v42 }
  0xff   : > { %406 = vst [vmem:[%s975_s19 + $0x38] sm:$0xff] %v373_v44 }
 0x100   : > { %v331_v45 = vpop.f32.mrf.mxu2 }
 0x101   : > { %v396_v46 = vpop.f32.mrf.mxu3 }
 0x102   : > { %v397_v47 = vadd.f32 %v396_v46, %v331_v45 }
 0x104   : > { %414 = vst [vmem:[%s975_s19 + $0x78] sm:$0xff] %v397_v47 }
 0x105   : > { %746 = shalt.err (!%p743_p0)
}
 0x106   : > { %s812_s30 = smov 128   ;;  %s813_s7 = smov 8  }
 0x107   : > { %586 = dma.vmem_to_hbm [thread:$0]  (%p908_p5), %s430_s21, 2048, %s432_s22, %s416_s12, %s812_s30, %s812_s30, %s813_s7  }
 0x108 PF: > { %s446_s15 = sand.u32 1, %s785_s9   ;;  %p597_p3 = pnand %p531_p11, %p878_p6 }
 0x109   : > { %s447_s17 = scalar_lea.sflag [#allocation4], %s446_s15 }
 0x10a   : > { %p598_p7 = pneg %p597_p3 }
 0x10c   : > { %780 = dma.done.wait (%p598_p7), %s447_s17, 2048  }
 0x10d   : > { %782 = vsyncadd (%p598_p7), %s447_s17, 4294965248  ;;  %s19_s14 = sadd.s32 1, %s805_s14   ;;  %s1042_s9 = smov %s789_s10 }
 0x10e   : > { %p16_p9 = scmp.ge.s32.totalorder %s19_s14, 4   ;;  %s1043_s10 = smov %s793_s11 }
 0x10f   : > { %s1044_s11 = smov %s917_s8  ;;  %s1045_s12 = smov %s801_s13 }
 0x110   : > { %s1046_s13 = smov %s1048_s29  ;;  %18 = sbr.rel (!%p16_p9) target bundleno = 7 (0x7), region = 78 }
 0x115   :  { %453 = vsyncpa [#allocation3], 1 }
 0x116   :  { %455 = vsyncpa [#allocation3 + $0x1], 1 }
 0x117   :  { %456 = vsyncpa [#allocation6], 1 }
 0x118   :  { %457 = vsyncpa [#allocation4], 1 }
 0x119   :  { %459 = vsyncpa [#allocation4 + $0x1], 1 }

</bundles_post_ra>
